<compile_context>
chip_gen: v7x
topology: tpu7x:2x2x1
jax: 0.10.0
libtpu: 0.0.40
codegen_flags: <defaults>
</compile_context>

<pallas_src>
import functools

import jax
import jax.numpy as jnp
from jax.experimental import pallas as pl
from jax.experimental.pallas import tpu as pltpu


# ----------------------- kernel 1: per-batch fused conv + pool -----------------------
def _precompute_kernel(x_ref, wall_ref, bt_ref, bpg_ref,
                       theta_ref, phiT_ref, g_ref, pool_scr):
    """grid = (B, 4).  Block k holds the Np rows of sub-grid (i, j) = (k//2, k%2).

    One fused (Np, C) @ (C, 2*C8+C2) matmul per sub-grid block:
      * theta rows (bias-added, bf16) are written straight out,
      * phi/g columns are folded into a running max (2x2 max-pool == max over the
        4 sub-grid blocks in this row order); bias is added AFTER pooling (max
        commutes with adding a per-channel constant)."""
    bf16 = jnp.bfloat16
    C8 = phiT_ref.shape[1]
    k = pl.program_id(1)

    y = jnp.dot(x_ref[0].astype(bf16), wall_ref[...],
                preferred_element_type=jnp.float32)                 # (Np, 2*C8+C2) f32

    theta_ref[0] = (y[:, :C8] + bt_ref[...]).astype(bf16)           # (Np, C8)

    @pl.when(k == 0)
    def _():
        pool_scr[...] = jnp.full_like(pool_scr, -jnp.inf)

    pool_scr[...] = jnp.maximum(pool_scr[...], y[:, C8:])           # running 2x2 max-pool

    @pl.when(k == pl.num_programs(1) - 1)
    def _():
        pooled = pool_scr[...] + bpg_ref[...]                       # (Np, C8+C2)
        phiT_ref[0] = pooled[:, :C8].T.astype(bf16)                 # (C8, Np) pre-transposed
        g_ref[0] = pooled[:, C8:].astype(bf16)                      # (Np, C2)


# ----------------------- kernel 2: attention + output projection ---------------------
def _attn_kernel(x_ref, th_ref, phiT_ref, g_ref, wa_ref, ba_ref, sig_ref, o_ref,
                 *, bf16_exp):
    bf16 = jnp.bfloat16

    s = jnp.dot(th_ref[0], phiT_ref[0],
                preferred_element_type=jnp.float32)                 # (TQ, Np) f32
    m = jnp.max(s, axis=-1, keepdims=True)
    if bf16_exp:
        e = jnp.exp((s - m).astype(bf16))                           # bf16 EUP (v6e/v7x)
    else:
        e = jnp.exp(s - m)                                          # f32 (v5e & older)
    l = jnp.sum(e, axis=-1, keepdims=True, dtype=jnp.float32)       # f32 accumulation

    # attend first, normalize the small (TQ, C2) result afterwards (EUP reciprocal)
    ag = jnp.dot(e.astype(bf16), g_ref[0],
                 preferred_element_type=jnp.float32)                # (TQ, C2) f32
    ag = ag * pl.reciprocal(l, approx=True)

    y = jnp.dot(ag.astype(bf16), wa_ref[...],
                preferred_element_type=jnp.float32) + ba_ref[...]   # (TQ, C) f32

    o_ref[0] = (x_ref[0] + sig_ref[0, 0] * y).astype(o_ref.dtype)


# ----------------------------------- wrapper -----------------------------------------
def _bf16_eup_default():
    """bf16 exp is a win on v6e/v7x (bf16 EUP); keep f32 on v5e and older."""
    try:
        kind = jax.devices()[0].device_kind.lower()
    except Exception:
        return True
    return not any(s in kind for s in ("v2", "v3", "v4", "v5"))


def _vmem_limit_bytes(N, Np, C, C8, C2, TQ):
    f32, bf = 4, 2
    KP = C8 + C2
    # attention call: double-buffered streamed blocks + replicated weights + live temps
    attn = (2 * (TQ * C * f32 + TQ * C8 * bf + C8 * Np * bf + Np * C2 * bf
                 + TQ * C * f32)
            + C2 * C * bf + C * f32
            + TQ * Np * (f32 + bf) + TQ * C2 * f32 + TQ * C * f32)
    # precompute call
    pre = (2 * (Np * C * f32 + Np * C8 * bf + C8 * Np * bf + Np * C2 * bf)
           + C * (2 * C8 + C2) * bf + (C8 + KP) * f32
           + 2 * Np * KP * f32)
    est = max(attn, pre)
    return int(min(max(2 * est, 32 << 20), 64 << 20))


def self_attn_forward(x_nchw, params, *, tq=512, bf16_exp=None):
    wt, bt, wp, bp, wg, bg, wa, ba, sigma = params
    B, C, H, W = x_nchw.shape
    assert H % 2 == 0 and W % 2 == 0
    C8, C2 = C // 8, C // 2
    H2, W2 = H // 2, W // 2
    N, Np = H * W, H2 * W2

    TQ = min(tq, N)
    assert N % TQ == 0 and TQ % 8 == 0, (N, TQ)
    if bf16_exp is None:
        bf16_exp = _bf16_eup_default()
    bf16 = jnp.bfloat16

    # ---- layout plumbing (no FLOPs) in plain JAX: sub-grid-major row order ----
    x_nhwc = jnp.transpose(x_nchw, (0, 2, 3, 1))                    # (B, H, W, C)
    x_sg = (x_nhwc.reshape(B, H2, 2, W2, 2, C)
            .transpose(0, 2, 4, 1, 3, 5)                            # (b, i, j, hp, wp, c)
            .reshape(B, N, C))

    # fused / pre-transposed weights: bf16 MXU operands, f32 biases
    w_all = jnp.concatenate([wt, wp, wg], axis=0).T.astype(bf16)    # (C, 2*C8+C2)
    bpg = jnp.concatenate([bp, bg], axis=1)                         # (1, C8+C2) f32
    wa_t = wa.T.astype(bf16)                                        # (C2, C)

    vmem_limit = _vmem_limit_bytes(N, Np, C, C8, C2, TQ)

    def rep(shape):
        n = len(shape)
        return pl.BlockSpec(shape, lambda i, j, _n=n: (0,) * _n)

    # ---- call 1: fused theta/phi/g 1x1 convs + 2x2 max-pool, once per batch ----
    theta_sg, phi_t, g_pool = pl.pallas_call(
        _precompute_kernel,
        out_shape=(jax.ShapeDtypeStruct((B, N, C8), bf16),
                   jax.ShapeDtypeStruct((B, C8, Np), bf16),
                   jax.ShapeDtypeStruct((B, Np, C2), bf16)),
        grid=(B, 4),
        in_specs=[
            pl.BlockSpec((1, Np, C), lambda b, k: (b, k, 0)),       # x sub-grid block
            rep(w_all.shape), rep(bt.shape), rep(bpg.shape),
        ],
        out_specs=(
            pl.BlockSpec((1, Np, C8), lambda b, k: (b, k, 0)),      # theta (un-pooled)
            pl.BlockSpec((1, C8, Np), lambda b, k: (b, 0, 0)),      # pooled phi^T
            pl.BlockSpec((1, Np, C2), lambda b, k: (b, 0, 0)),      # pooled g
        ),
        scratch_shapes=[pltpu.VMEM((Np, C8 + C2), jnp.float32)],    # pooling accumulator
        compiler_params=pltpu.CompilerParams(
            dimension_semantics=("parallel", "arbitrary"),
            vmem_limit_bytes=vmem_limit),
    )(x_sg, w_all, bt, bpg)

    # ---- call 2: attention (streamed q tiles, no scratch carry -> fully parallel) ----
    out_sg = pl.pallas_call(
        functools.partial(_attn_kernel, bf16_exp=bf16_exp),
        out_shape=jax.ShapeDtypeStruct((B, N, C), x_nchw.dtype),
        grid=(B, N // TQ),
        in_specs=[
            pl.BlockSpec((1, TQ, C), lambda b, q: (b, q, 0)),       # x tile (residual, f32)
            pl.BlockSpec((1, TQ, C8), lambda b, q: (b, q, 0)),      # theta tile
            pl.BlockSpec((1, C8, Np), lambda b, q: (b, 0, 0)),      # phi^T (per batch)
            pl.BlockSpec((1, Np, C2), lambda b, q: (b, 0, 0)),      # g     (per batch)
            rep(wa_t.shape), rep(ba.shape),
            pl.BlockSpec(memory_space=pltpu.MemorySpace.SMEM),      # sigma scalar
        ],
        out_specs=pl.BlockSpec((1, TQ, C), lambda b, q: (b, q, 0)),
        compiler_params=pltpu.CompilerParams(
            dimension_semantics=("parallel", "parallel"),
            vmem_limit_bytes=vmem_limit),
    )(x_sg, theta_sg, phi_t, g_pool, wa_t, ba, sigma)

    # undo the sub-grid permutation, back to NCHW
    out_nhwc = (out_sg.reshape(B, 2, 2, H2, W2, C)
                .transpose(0, 3, 1, 4, 2, 5)                        # (b, hp, i, wp, j, c)
                .reshape(B, H, W, C))
    return jnp.transpose(out_nhwc, (0, 3, 1, 2))


# ---------------------- pure-JAX reference for validation ----------------------
def _maxpool2_nchw(x):
    B, C, H, W = x.shape
    return jnp.max(x.reshape(B, C, H // 2, 2, W // 2, 2), axis=(3, 5))


def self_attn_reference(x, params):
    wt, bt, wp, bp, wg, bg, wa, ba, sigma = params
    B, C, H, W = x.shape

    def conv1x1(z, w, b):
        return jnp.einsum('bchw,oc->bohw', z, w) + b.reshape(1, -1, 1, 1)

    theta = conv1x1(x, wt, bt[0]).reshape(B, C // 8, H * W)
    phi = _maxpool2_nchw(conv1x1(x, wp, bp[0])).reshape(B, C // 8, H * W // 4)
    attn = jax.nn.softmax(jnp.einsum('bcn,bcm->bnm', theta, phi), axis=-1)
    g = _maxpool2_nchw(conv1x1(x, wg, bg[0])).reshape(B, C // 2, H * W // 4)
    attn_g = jnp.einsum('bcm,bnm->bcn', g, attn).reshape(B, C // 2, H, W)
    attn_g = conv1x1(attn_g, wa, ba[0])
    return x + sigma[0, 0] * attn_g


if __name__ == "__main__":
    B, C, H, W = 2, 32, 8, 8
    C8, C2 = C // 8, C // 2

    key = jax.random.PRNGKey(0)
    ks = jax.random.split(key, 10)
    x = jax.random.normal(ks[0], (B, C, H, W), jnp.float32)

    # deterministic synthetic parameters (1x1 conv weights squeezed to 2D)
    wt = 0.1 * jax.random.normal(ks[1], (C8, C), jnp.float32)
    bt = 0.1 * jax.random.normal(ks[2], (1, C8), jnp.float32)
    wp = 0.1 * jax.random.normal(ks[3], (C8, C), jnp.float32)
    bp = 0.1 * jax.random.normal(ks[4], (1, C8), jnp.float32)
    wg = 0.1 * jax.random.normal(ks[5], (C2, C), jnp.float32)
    bg = 0.1 * jax.random.normal(ks[6], (1, C2), jnp.float32)
    wa = 0.1 * jax.random.normal(ks[7], (C, C2), jnp.float32)
    ba = 0.1 * jax.random.normal(ks[8], (1, C), jnp.float32)
    # module __init__ sets sigma = 0 (output would equal x); use 0.5 to exercise the path
    sigma = jnp.full((1, 1), 0.5, jnp.float32)

    params = (wt, bt, wp, bp, wg, bg, wa, ba, sigma)

    # tq=32 -> two query tiles per batch, exercising the q-tiled / streamed-theta path
    out = jax.block_until_ready(self_attn_forward(x, params, tq=32))
    ref = jax.block_until_ready(self_attn_reference(x, params))

    assert out.shape == (B, C, H, W)
    # bf16 MXU operands / bf16 exp (f32 accumulation, f32 softmax stats, f32 residual),
    # so tolerance is sized for bf16 rounding of the matmul / exp operands.
    err = float(jnp.max(jnp.abs(out - ref)))
    assert jnp.allclose(out, ref, rtol=2e-2, atol=2e-2), err
    print("KERNEL_OK")
</pallas_src>

<mosaic_0001>
module attributes {stable_mosaic.version = 11 : i64} {
  func.func @_precompute_kernel(%arg0: i32, %arg1: i32, %arg2: memref<1x16x32xf32, #tpu.memory_space<vmem>>, %arg3: memref<32x24xbf16, #tpu.memory_space<vmem>>, %arg4: memref<1x4xf32, #tpu.memory_space<vmem>>, %arg5: memref<1x20xf32, #tpu.memory_space<vmem>>, %arg6: memref<1x16x4xbf16, #tpu.memory_space<vmem>>, %arg7: memref<1x4x16xbf16, #tpu.memory_space<vmem>>, %arg8: memref<1x16x16xbf16, #tpu.memory_space<vmem>>, %arg9: memref<16x20xf32, #tpu.memory_space<vmem>>) attributes {dimension_semantics = [#tpu.dimension_semantics<parallel>, #tpu.dimension_semantics<arbitrary>], iteration_bounds = array<i64: 2, 4>, scalar_prefetch = 0 : i64, scratch_operands = 1 : i64, tpu.core_type = #tpu.core_type<tc>, window_params = [{transform_indices = @transform_0, window_bounds = array<i64: 1, 16, 32>}, {pipeline_mode = #tpu.pipeline_mode<synchronous>, transform_indices = @transform_1, window_bounds = array<i64: 32, 24>}, {pipeline_mode = #tpu.pipeline_mode<synchronous>, transform_indices = @transform_2, window_bounds = array<i64: 1, 4>}, {pipeline_mode = #tpu.pipeline_mode<synchronous>, transform_indices = @transform_3, window_bounds = array<i64: 1, 20>}, {transform_indices = @transform_4, window_bounds = array<i64: 1, 16, 4>}, {transform_indices = @transform_5, window_bounds = array<i64: 1, 4, 16>}, {transform_indices = @transform_6, window_bounds = array<i64: 1, 16, 16>}]} {
    %c0 = arith.constant 0 : index
    %c0_0 = arith.constant 0 : index
    %c0_1 = arith.constant 0 : index
    %0 = vector.load %arg2[%c0, %c0_0, %c0_1] : memref<1x16x32xf32, #tpu.memory_space<vmem>>, vector<1x16x32xf32>
    %1 = vector.shape_cast %0 : vector<1x16x32xf32> to vector<16x32xf32>
    %2 = arith.truncf %1 : vector<16x32xf32> to vector<16x32xbf16>
    %c0_2 = arith.constant 0 : index
    %c0_3 = arith.constant 0 : index
    %3 = vector.load %arg3[%c0_2, %c0_3] : memref<32x24xbf16, #tpu.memory_space<vmem>>, vector<32x24xbf16>
    %cst = arith.constant dense<0.000000e+00> : vector<16x24xf32>
    %4 = tpu.matmul %2, %3, %cst {dimension_numbers = #tpu.dot_dimension_numbers<[1], [0], [0], [1], [0, 0, 1, 1], [], []>} : vector<16x32xbf16>, vector<32x24xbf16>, vector<16x24xf32> -> vector<16x24xf32>
    %5 = vector.extract_strided_slice %4 {offsets = [0, 0], sizes = [16, 4], strides = [1, 1]} : vector<16x24xf32> to vector<16x4xf32>
    %c0_4 = arith.constant 0 : index
    %c0_5 = arith.constant 0 : index
    %6 = vector.load %arg4[%c0_4, %c0_5] : memref<1x4xf32, #tpu.memory_space<vmem>>, vector<1x4xf32>
    %7 = vector.broadcast %6 : vector<1x4xf32> to vector<16x4xf32>
    %8 = arith.addf %5, %7 : vector<16x4xf32>
    %9 = arith.truncf %8 : vector<16x4xf32> to vector<16x4xbf16>
    %c0_6 = arith.constant 0 : index
    %c0_7 = arith.constant 0 : index
    %c0_8 = arith.constant 0 : index
    %10 = vector.load %arg6[%c0_6, %c0_7, %c0_8] : memref<1x16x4xbf16, #tpu.memory_space<vmem>>, vector<1x16x4xbf16>
    %11 = vector.shape_cast %10 : vector<1x16x4xbf16> to vector<16x4xbf16>
    %12 = vector.shape_cast %9 : vector<16x4xbf16> to vector<1x16x4xbf16>
    tpu.vector_store %arg6[%c0_6, %c0_7, %c0_8], %12 {strides = array<i32>} : memref<1x16x4xbf16, #tpu.memory_space<vmem>>, vector<1x16x4xbf16>,
    %c0_i32 = arith.constant 0 : i32
    %13 = arith.cmpi eq, %arg1, %c0_i32 : i32
    %14 = arith.extui %13 : i1 to i32
    %c0_i32_9 = arith.constant 0 : i32
    %15 = arith.cmpi ne, %14, %c0_i32_9 : i32
    scf.if %15 {
      %cst_15 = arith.constant 0xFF800000 : f32
      %23 = vector.broadcast %cst_15 : f32 to vector<16x20xf32>
      %c0_16 = arith.constant 0 : index
      %c0_17 = arith.constant 0 : index
      %24 = vector.load %arg9[%c0_16, %c0_17] : memref<16x20xf32, #tpu.memory_space<vmem>>, vector<16x20xf32>
      tpu.vector_store %arg9[%c0_16, %c0_17], %23 {strides = array<i32>} : memref<16x20xf32, #tpu.memory_space<vmem>>, vector<16x20xf32>,
    } else {
    }
    %c0_10 = arith.constant 0 : index
    %c0_11 = arith.constant 0 : index
    %16 = vector.load %arg9[%c0_10, %c0_11] : memref<16x20xf32, #tpu.memory_space<vmem>>, vector<16x20xf32>
    %17 = vector.extract_strided_slice %4 {offsets = [0, 4], sizes = [16, 20], strides = [1, 1]} : vector<16x24xf32> to vector<16x20xf32>
    %18 = arith.maximumf %16, %17 : vector<16x20xf32>
    %c0_12 = arith.constant 0 : index
    %c0_13 = arith.constant 0 : index
    %19 = vector.load %arg9[%c0_12, %c0_13] : memref<16x20xf32, #tpu.memory_space<vmem>>, vector<16x20xf32>
    tpu.vector_store %arg9[%c0_12, %c0_13], %18 {strides = array<i32>} : memref<16x20xf32, #tpu.memory_space<vmem>>, vector<16x20xf32>,
    %c3_i32 = arith.constant 3 : i32
    %20 = arith.cmpi eq, %arg1, %c3_i32 : i32
    %21 = arith.extui %20 : i1 to i32
    %c0_i32_14 = arith.constant 0 : i32
    %22 = arith.cmpi ne, %21, %c0_i32_14 : i32
    scf.if %22 {
      %c0_15 = arith.constant 0 : index
      %c0_16 = arith.constant 0 : index
      %23 = vector.load %arg9[%c0_15, %c0_16] : memref<16x20xf32, #tpu.memory_space<vmem>>, vector<16x20xf32>
      %c0_17 = arith.constant 0 : index
      %c0_18 = arith.constant 0 : index
      %24 = vector.load %arg5[%c0_17, %c0_18] : memref<1x20xf32, #tpu.memory_space<vmem>>, vector<1x20xf32>
      %25 = vector.broadcast %24 : vector<1x20xf32> to vector<16x20xf32>
      %26 = arith.addf %23, %25 : vector<16x20xf32>
      %27 = vector.extract_strided_slice %26 {offsets = [0, 0], sizes = [16, 4], strides = [1, 1]} : vector<16x20xf32> to vector<16x4xf32>
      %28 = tpu.transpose %27, [1, 0] : vector<16x4xf32> -> vector<4x16xf32>
      %29 = arith.truncf %28 : vector<4x16xf32> to vector<4x16xbf16>
      %c0_19 = arith.constant 0 : index
      %c0_20 = arith.constant 0 : index
      %c0_21 = arith.constant 0 : index
      %30 = vector.load %arg7[%c0_19, %c0_20, %c0_21] : memref<1x4x16xbf16, #tpu.memory_space<vmem>>, vector<1x4x16xbf16>
      %31 = vector.shape_cast %30 : vector<1x4x16xbf16> to vector<4x16xbf16>
      %32 = vector.shape_cast %29 : vector<4x16xbf16> to vector<1x4x16xbf16>
      tpu.vector_store %arg7[%c0_19, %c0_20, %c0_21], %32 {strides = array<i32>} : memref<1x4x16xbf16, #tpu.memory_space<vmem>>, vector<1x4x16xbf16>,
      %33 = vector.extract_strided_slice %26 {offsets = [0, 4], sizes = [16, 16], strides = [1, 1]} : vector<16x20xf32> to vector<16x16xf32>
      %34 = arith.truncf %33 : vector<16x16xf32> to vector<16x16xbf16>
      %c0_22 = arith.constant 0 : index
      %c0_23 = arith.constant 0 : index
      %c0_24 = arith.constant 0 : index
      %35 = vector.load %arg8[%c0_22, %c0_23, %c0_24] : memref<1x16x16xbf16, #tpu.memory_space<vmem>>, vector<1x16x16xbf16>
      %36 = vector.shape_cast %35 : vector<1x16x16xbf16> to vector<16x16xbf16>
      %37 = vector.shape_cast %34 : vector<16x16xbf16> to vector<1x16x16xbf16>
      tpu.vector_store %arg8[%c0_22, %c0_23, %c0_24], %37 {strides = array<i32>} : memref<1x16x16xbf16, #tpu.memory_space<vmem>>, vector<1x16x16xbf16>,
    } else {
    }
    return
  }
  func.func @transform_0(%arg0: i32, %arg1: i32) -> (i32, i32, i32) {
    %c0_i32 = arith.constant 0 : i32
    %c0_i32_0 = arith.constant 0 : i32
    return %arg0, %arg1, %c0_i32 : i32, i32, i32
  }
  func.func @transform_1(%arg0: i32, %arg1: i32) -> (i32, i32) {
    %c0_i32 = arith.constant 0 : i32
    %c0_i32_0 = arith.constant 0 : i32
    %c0_i32_1 = arith.constant 0 : i32
    return %c0_i32, %c0_i32_0 : i32, i32
  }
  func.func @transform_2(%arg0: i32, %arg1: i32) -> (i32, i32) {
    %c0_i32 = arith.constant 0 : i32
    %c0_i32_0 = arith.constant 0 : i32
    %c0_i32_1 = arith.constant 0 : i32
    return %c0_i32, %c0_i32_0 : i32, i32
  }
  func.func @transform_3(%arg0: i32, %arg1: i32) -> (i32, i32) {
    %c0_i32 = arith.constant 0 : i32
    %c0_i32_0 = arith.constant 0 : i32
    %c0_i32_1 = arith.constant 0 : i32
    return %c0_i32, %c0_i32_0 : i32, i32
  }
  func.func @transform_4(%arg0: i32, %arg1: i32) -> (i32, i32, i32) {
    %c0_i32 = arith.constant 0 : i32
    %c0_i32_0 = arith.constant 0 : i32
    return %arg0, %arg1, %c0_i32 : i32, i32, i32
  }
  func.func @transform_5(%arg0: i32, %arg1: i32) -> (i32, i32, i32) {
    %c0_i32 = arith.constant 0 : i32
    %c0_i32_0 = arith.constant 0 : i32
    %c0_i32_1 = arith.constant 0 : i32
    return %arg0, %c0_i32, %c0_i32_0 : i32, i32, i32
  }
  func.func @transform_6(%arg0: i32, %arg1: i32) -> (i32, i32, i32) {
    %c0_i32 = arith.constant 0 : i32
    %c0_i32_0 = arith.constant 0 : i32
    %c0_i32_1 = arith.constant 0 : i32
    return %arg0, %c0_i32, %c0_i32_0 : i32, i32, i32
  }
}

</mosaic_0001>

<bundles_post_ra>
// kernel: tpu_custom_call.1
= control target key start
LH: loop header
LB: loop body
LE: loop exit
PB: predicated region body
PF: predicated region fallthrough
CT: control target
= control target key end

     0   :  { %s1176_s0 = inlined_call_operand.vmem [shape: f32[2,64,32], index: 0, kind: input, shape index: {}]   ;;  %s1177_s1 = inlined_call_operand.vmem [shape: bf16[32,24], index: 1, kind: input, shape index: {}]   ;;  %s1178_s2 = inlined_call_operand.vmem [shape: f32[1,4], index: 2, kind: input, shape index: {}]   ;;  %s1179_s3 = inlined_call_operand.vmem [shape: f32[1,20], index: 3, kind: input, shape index: {}]   ;;  %s1180_s4 = inlined_call_operand.vmem [shape: bf16[2,64,4], index: 4, kind: output, shape index: {0}]   ;;  %s1181_s5 = inlined_call_operand.hbm [shape: bf16[2,4,16], index: 5, kind: output, shape index: {1}]   ;;  %s1182_s6 = inlined_call_operand.hbm [shape: bf16[2,16,16], index: 6, kind: output, shape index: {2}]  }
   0x1   :  { %1183 = sst [smem:[#allocation9_spill]] %s1177_s1 }
   0x2   :  { %12 = vsyncpa [#allocation4], 0 }
   0x3   :  { %14 = vsyncpa [#allocation4 + $0x1], 0 }
   0x4   :  { %15 = vsyncpa [#allocation6], 0 }
   0x5   :  { %17 = vsyncpa [#allocation6 + $0x1], 0  ;;  %s982_s21 = smov 0   ;;  %s984_s22 = smov 0  }
   0x6   :  { %s986_s23 = smov 0   ;;  %s988_s24 = smov 0  }
   0x7   :  { %s990_s25 = smov 0   ;;  %s992_s26 = smov 0  }
   0x8   :  { %s994_s27 = smov 0   ;;  %s996_s28 = smov 0  }
   0x9 LB: > { %s677_s29 = sadd.s32 4294967295, %s936_s28   ;;  %s678_s30 = sadd.s32 4294967294, %s936_s28   ;;  %s936_s28 = sphi %s996_s28, %s23_s28   ;;  %s932_s27 = sphi %s994_s27, %s1195_s27   ;;  %s928_s26 = sphi %s992_s26, %s1194_s26   ;;  %s924_s25 = sphi %s990_s25, %s1193_s25   ;;  %s920_s24 = sphi %s988_s24, %s1192_s24   ;;  %s916_s23 = sphi %s986_s23, %s1191_s23   ;;  %s912_s22 = sphi %s984_s22, %s1190_s22   ;;  %s908_s21 = sphi %s982_s21, %s1189_s21  }
   0xa   : > { %s32_s7 = sadd.s32 1, %s928_s26  ;;  %s35_s8 = sadd.s32 1, %s932_s27 }
   0xb   : > { %p33_p0 = scmp.ge.s32.totalorder %s32_s7, 4  ;;  %p171_p1 = scmp.ne.s32.totalorder %s916_s23, %s912_s22 }
   0xc   : > { %p172_p2 = scmp.eq.s32.totalorder %s677_s29, 7  ;;  %p177_p4 = scmp.ne.s32.totalorder %s912_s22, %s908_s21 }
   0xd   : > { %s1197_s7 = smov (%p33_p0, %s32_s7), 0  ;;  %s1199_s8 = smov (!%p33_p0, %s35_s8), %s932_s27 }
   0xe   : > { %p1031_p3 = por %p172_p2, %p171_p1  ;;  %p37_p5 = scmp.ge.s32.totalorder %s1199_s8, 2 }
   0xf   : > { %p178_p6 = scmp.eq.s32.totalorder %s678_s30, 7  ;;  %p681_p7 = scmp.ge.s32.totalorder %s936_s28, 1 }
  0x10   : > { %p244_p8 = scmp.lt.s32.totalorder %s936_s28, 9  ;;  %s1201_s8 = smov (%p37_p5, %s1199_s8), 0 }
  0x11   : > { %p1041_p9 = por %p178_p6, %p177_p4  ;;  %s158_s11 = ssub.s32 %s932_s27, %s1201_s8 }
  0x12   : > { %p245_p10 = pnand %p681_p7, %p244_p8  ;;  %s161_s12 = sadd.s32 1, %s916_s23 }
  0x13   : > { %p159_p11 = scmp.eq.s32.totalorder %s158_s11, 0  ;;  %s1052_s14 = sand.u32 (!%p245_p10), 1, %s912_s22   ;;  %v938_v0 = vmov (!%p245_p10), 0.0   ;;  %vm939_vm0 = vmmov (!%p245_p10), 0   ;;  %vm332_vm1 = vcmask (!%p245_p10), 261120   ;;  %vm394_vm2 = vcmask (!%p245_p10), 27648  }
  0x14   : > { %248 = sbr.rel (%p245_p10) target bundleno = 564 (0x234), region = 36  ;;  %716 = vmatprep.subr.bf16.mxu0 (!%p245_p10), %v938_v0  ;;  %s1186_s1 = sld [smem:[#allocation9_spill]] (!%p245_p10)  ;;  %720 = vmatprep.mubr.msk.bf16.mxu0 (!%p245_p10), %vm939_vm0, %v938_v0  ;;  %v693_v6 = vld [vmem:[%s1178_s2] ss:$0 sm:$0xff] (!%p245_p10) }
  0x15   : > { %s1049_s13 = scalar_select %p159_p11, %s916_s23, %s161_s12  }
  0x16   : > { %s684_s29 = sshll.u32 (!%p245_p10), %s920_s24, 1  ;;  %p293_p12 = scmp.lt.s32.totalorder (!%p245_p10), %s924_s25, 1 }
  0x17   : > { %p295_p13 = scmp.lt.s32.totalorder (!%p245_p10), %s684_s29, 7  ;;  %s1188_s17 = sshll.u32 (!%p245_p10), %s1052_s14, 3 }
  0x18   : > { %p696_p0 = scmp.ne.s32.totalorder (!%p245_p10), %s920_s24, 0 }
  0x1a   : > { %v808_v1 = vld [vmem:[%s1186_s1] sm:$0xff] (!%p245_p10)   ;;  %v809_v2 = vld [vmem:[%s1186_s1 + $0x8] sm:$0xff] (!%p245_p10)  }
  0x1b   : > { %717 = vmatpush3.bf16.msra.mxu0 %v808_v1  ;;  %s294_s30 = scalar_select %p293_p12, %s924_s25, 1 }
  0x1c   : > { %718 = vmatprep.subr.bf16.mxu0 %v938_v0  ;;  %s1203_s29 = smov (!%p295_p13, %s684_s29), 7  ;;  %vm401_vm3 = vcmask (!%p696_p0), 162816   ;;  %v940_v15 = vmov (!%p696_p0), -inf  }
  0x1d   : > { %s685_s11 = sshll.u32 %s294_s30, 3  ;;  %402 = vst.msk [vmem:[#allocation2] sm:$0xff] (!%p696_p0), %vm401_vm3, %v940_v15  ;;  %403 = vst.msk [vmem:[#allocation2 + $0x8] sm:$0xff] (!%p696_p0), %vm401_vm3, %v940_v15 }
  0x1e   : > { %s298_s12 = sadd.s32 %s685_s11, %s1203_s29 }
  0x1f   : > { %719 = vmatpush3.bf16.msra.mxu0 %v809_v2  ;;  %s686_s16 = sshll.u32 %s298_s12, 3  ;;  %s689_s1 = sshll.u32 %s298_s12, 2 }
  0x20   : > { %s300_s18 = scalar_lea.vmem %s1176_s0, %s686_s16  ;;  %s310_s15 = scalar_lea.vmem %s1180_s4, %s689_s1 }
  0x21   : > { %v313_v3 = vld [vmem:[%s300_s18] sm:$0xff]  ;;  %v314_v4 = vld [vmem:[%s300_s18 + $0x8] sm:$0xff]  ;;  %s1187_s16 = sshll.u32 %s1052_s14, 1  ;;  %s1080_s12 = scalar_lea.vmem [#allocation5], %s1188_s17 }
  0x22   : > { %v315_v5 = vpack.c.bf16 %v314_v4, %v313_v3  ;;  %s1076_s11 = scalar_lea.vmem [#allocation3], %s1187_s16 }
  0x24   : > { %721 = vmatmul.mubr.msk.bf16.vlgmr.msra.gmra.mrb[0].mxu0 %vm332_vm1, %v315_v5 }
  0xf7   : > { %v370_v7 = vpop.f32.mrb[0].mxu0 }
  0xf8   : > { %v384_v8 = vadd.f32 %v693_v6, %v370_v7  ;;  %v722_v9 = vpop.f32.mrb[1].mxu0  ;;  %400 = sbr.rel (%p696_p0) target bundleno = 255 (0xff), region = 40 }
  0xf9   : > { %v373_v10 = vpop.f32.mrb[2].mxu0 }
  0xfa   : > { %v708_v11 = vpack.c.bf16 %v384_v8, %v384_v8  ;;  %v385_v12 = vadd.f32 %v693_v6, %v373_v10  ;;  %v723_v13 = vpop.f32.mrb[3].mxu0 }
  0xfc   : > { %395 = vst.msk [vmem:[%s310_s15] sm:$0xf] %vm394_vm2, %v708_v11  ;;  %v709_v14 = vpack.c.bf16 %v385_v12, %v385_v12 }
  0xfe   : > { %396 = vst.msk [vmem:[%s310_s15 + $0x4] sm:$0xf] %vm394_vm2, %v709_v14 }
  0xff PF: > { %s941_s1 = smov 124   ;;  %v404_v16 = vld [vmem:[#allocation2] sm:$0xff]  ;;  %vm416_vm4 = vcmask 162816   ;;  %v405_v19 = vld [vmem:[#allocation2 + $0x8] sm:$0xff]  ;;  %p697_p1 = scmp.ne.s32.totalorder %s920_s24, 3 }
 0x100   : > { %408 = vrot.lane.b32.xlu0 %v370_v7, %s941_s1  ;;  %v698_v23 = vld [vmem:[%s1179_s3] ss:$0 sm:$0xff] (!%p697_p1)  ;;  %s942_s20 = smov (!%p697_p1), 124   ;;  %vm481_vm5 = vcmask (!%p697_p1), 125952   ;;  %vm467_vm6 = vcmask (!%p697_p1), 123904  }
 0x104   : > { %410 = vrot.lane.b32.xlu0 %v373_v10, %s941_s1 }
 0x172   : > { %v409_v17 = vpop.permute.xlu0 %408 }
 0x173   : > { %v414_v18 = vmax.f32 %v404_v16, %v409_v17  ;;  %422 = sbr.rel (%p697_p1) target bundleno = 515 (0x203), region = 44 }
 0x175   : > { %417 = vst.msk [vmem:[#allocation2] sm:$0xff] %vm416_vm4, %v414_v18 }
 0x176   : > { %v411_v20 = vpop.permute.xlu0 %410 }
 0x177   : > { %v415_v21 = vmax.f32 %v405_v19, %v411_v20 }
 0x179   : > { %418 = vst.msk [vmem:[#allocation2 + $0x8] sm:$0xff] %vm416_vm4, %v415_v21 }
 0x17c   : > { %v423_v22 = vld [vmem:[#allocation2] sm:$0xff] }
 0x17d   : > { %v432_v25 = vadd.f32 %v698_v23, %v423_v22 }
 0x17f   : > { %434 = vxpose.xlu1.b32.start [1/2] (short) (narrow) %v432_v25, 8  ;;  %v710_v27 = vpack.c.bf16 %v432_v25, %v432_v25 }
 0x180   : > { %v424_v24 = vld [vmem:[#allocation2 + $0x8] sm:$0xff] }
 0x181   : > { %v433_v26 = vadd.f32 %v698_v23, %v424_v24  ;;  %475 = vrot.lane.b32.xlu0 %v710_v27, %s942_s20 }
 0x183   : > { %v711_v28 = vpack.c.bf16 %v433_v26, %v433_v26  ;;  %435 = vxpose.xlu1.b32.end [2/2] (short) (narrow) %v433_v26, 8 }
 0x185   : > { %477 = vrot.lane.b32.xlu0 %v711_v28, %s942_s20 }
 0x1f3   : > { %v476_v29 = vpop.permute.xlu0 %475 }
 0x1f4   : > { %482 = vst.msk [vmem:[%s1080_s12] sm:$0xf] %vm481_vm5, %v476_v29 }
 0x1f7   : > { %v478_v30 = vpop.permute.xlu0 %477 }
 0x1f8   : > { %483 = vst.msk [vmem:[%s1080_s12 + $0x4] sm:$0xf] %vm481_vm5, %v478_v30 }
 0x1ff   : > { %v450_v31 = vpop.trf.xlu1 }
 0x200   : > { %v466_v32 = vpack.c.bf16 %v450_v31, %v450_v31 }
 0x202   : > { %468 = vst.msk [vmem:[%s1076_s11] sm:$0x3] %vm467_vm6, %v466_v32 }
 0x203 PF: > { %s703_s24 = sshll.u32 %s924_s25, 5  ;;  %s516_s16 = sshll.u32 %s1076_s11, 4  ;;  %s517_s16 = int_to_ptr.vmem [resolvable:$true] %s516_s16 }
 0x204   : > { %s1094_s15 = scalar_lea.hbm %s1181_s5, %s703_s24  ;;  %s494_s17 = scalar_lea.sflag [#allocation4], %s1052_s14 }
 0x205   : > { %s810_s1 = scalar_lea.vmem %s517_s16, 32  ;;  %s943_s18 = smov [#allocation3]  }
 0x206   : > { %p811_p2 = scmp.ne.s32.totalorder %s517_s16, %s810_s1  ;;  %s814_s19 = sshll.u32 %s943_s18, 4  ;;  %s815_s19 = int_to_ptr.vmem [resolvable:$false] %s814_s19 }
 0x207   : > { %s816_s20 = scalar_lea.vmem %s815_s19, 64  ;;  %p817_p6 = scmp.lt.s32.totalorder %s517_s16, %s815_s19 }
 0x208   : > { %p812_p4 = pnand %p811_p2, %p1031_p3  ;;  %p818_p7 = scmp.lt.s32.totalorder %s816_s20, %s810_s1 }
 0x20a   : > { %p813_p5 = pneg %p812_p4  ;;  %p819_p8 = por %p818_p7, %p817_p6 }
 0x20c   : > { %p820_p10 = pnand %p819_p8, %p813_p5 }
 0x20e   : > { %823 = shalt.err (!%p820_p10)
}
 0x20f   : > { %s824_s11 = scalar_lea.hbm %s1094_s15, 32  ;;  %s828_s30 = scalar_lea.hbm %s1181_s5, 64 }
 0x210   : > { %p825_p11 = scmp.ne.s32.totalorder %s1094_s15, %s824_s11  ;;  %p829_p0 = scmp.lt.u32.totalorder %s1094_s15, %s1181_s5 }
 0x211   : > { %p830_p1 = scmp.lt.u32.totalorder %s828_s30, %s824_s11  ;;  %p832_p4 = scmp.lt.u32.totalorder %s824_s11, %s1094_s15 }
 0x212   : > { %p826_p12 = pnand %p825_p11, %p1031_p3 }
 0x213   : > { %p831_p2 = por %p830_p1, %p829_p0 }
 0x214   : > { %p827_p13 = pneg %p826_p12 }
 0x215   : > { %p833_p5 = por %p832_p4, %p831_p2 }
 0x217   : > { %p834_p6 = pnand %p833_p5, %p827_p13 }
 0x219   : > { %837 = shalt.err (!%p834_p6)
}
 0x21a   : > { %724 = dma.vmem_to_hbm [thread:$0]  (%p1031_p3), %s517_s16, 32, %s1094_s15, %s494_s17  }
 0x21b   : > { %s712_s1 = sshll.u32 %s924_s25, 7  ;;  %s529_s20 = sshll.u32 %s1080_s12, 4  ;;  %s1122_s20 = int_to_ptr.vmem [resolvable:$true] %s529_s20 }
 0x21c   : > { %s1120_s18 = scalar_lea.hbm %s1182_s6, %s712_s1  ;;  %s499_s11 = scalar_lea.sflag [#allocation6], %s1052_s14 }
 0x21d   : > { %s838_s30 = scalar_lea.vmem %s1122_s20, 128  ;;  %s944_s19 = smov [#allocation5]  }
 0x21e   : > { %p839_p7 = scmp.ne.s32.totalorder %s1122_s20, %s838_s30  ;;  %s842_s15 = sshll.u32 %s944_s19, 4  ;;  %s843_s15 = int_to_ptr.vmem [resolvable:$false] %s842_s15 }
 0x21f   : > { %s844_s25 = scalar_lea.vmem %s843_s15, 256  ;;  %p845_p11 = scmp.lt.s32.totalorder %s1122_s20, %s843_s15 }
 0x220   : > { %p840_p8 = pnand %p839_p7, %p1031_p3  ;;  %p846_p12 = scmp.lt.s32.totalorder %s844_s25, %s838_s30 }
 0x222   : > { %p841_p10 = pneg %p840_p8  ;;  %p847_p13 = por %p846_p12, %p845_p11 }
 0x224   : > { %p848_p0 = pnand %p847_p13, %p841_p10 }
 0x226   : > { %851 = shalt.err (!%p848_p0)
}
 0x227   : > { %s852_s12 = scalar_lea.hbm %s1120_s18, 128  ;;  %s856_s1 = scalar_lea.hbm %s1182_s6, 256 }
 0x228   : > { %p853_p1 = scmp.ne.s32.totalorder %s1120_s18, %s852_s12  ;;  %p857_p5 = scmp.lt.u32.totalorder %s1120_s18, %s1182_s6 }
 0x229   : > { %p858_p6 = scmp.lt.u32.totalorder %s856_s1, %s852_s12  ;;  %p860_p8 = scmp.lt.u32.totalorder %s852_s12, %s1120_s18 }
 0x22a   : > { %p854_p2 = pnand %p853_p1, %p1031_p3 }
 0x22b   : > { %p859_p7 = por %p858_p6, %p857_p5 }
 0x22c   : > { %p855_p4 = pneg %p854_p2 }
 0x22d   : > { %p861_p10 = por %p860_p8, %p859_p7 }
 0x22f   : > { %p862_p11 = pnand %p861_p10, %p855_p4 }
 0x231   : > { %865 = shalt.err (!%p862_p11)
}
 0x232   : > { %s945_s30 = smov 64   ;;  %s946_s19 = smov 4  }
 0x233   : > { %725 = dma.vmem_to_hbm [thread:$0]  (%p1031_p3), %s1122_s20, 128, %s1120_s18, %s499_s11, %s945_s30, %s945_s30, %s946_s19  }
 0x234 PF: > { %p735_p12 = scmp.ge.s32.totalorder %s936_s28, 2  ;;  %s556_s15 = sand.u32 1, %s908_s21  }
 0x235   : > { %s557_s25 = scalar_lea.sflag [#allocation4], %s556_s15 }
 0x236   : > { %p729_p13 = pnand %p735_p12, %p1041_p9 }
 0x238   : > { %899 = dma.done.wait (!%p729_p13), %s557_s25, 32  }
 0x239   : > { %901 = vsyncadd (!%p729_p13), %s557_s25, 4294967264  ;;  %s566_s12 = scalar_lea.sflag [#allocation6], %s556_s15 }
 0x23a   : > { %903 = dma.done.wait (!%p729_p13), %s566_s12, 128  }
 0x23b   : > { %905 = vsyncadd (!%p729_p13), %s566_s12, 4294967168  ;;  %s23_s28 = sadd.s32 1, %s936_s28   ;;  %s1189_s21 = smov %s912_s22 }
 0x23c   : > { %p20_p0 = scmp.ge.s32.totalorder %s23_s28, 10   ;;  %s1190_s22 = smov %s916_s23 }
 0x23d   : > { %s1191_s23 = smov %s1049_s13  ;;  %s1192_s24 = smov %s928_s26 }
 0x23e   : > { %s1193_s25 = smov %s932_s27  ;;  %s1194_s26 = smov %s1197_s7 }
 0x23f   : > { %s1195_s27 = smov %s1201_s8  ;;  %22 = sbr.rel (!%p20_p0) target bundleno = 9 (0x9), region = 108 }
 0x246   :  { %571 = vsyncpa [#allocation4], 1 }
 0x247   :  { %573 = vsyncpa [#allocation4 + $0x1], 1 }
 0x248   :  { %574 = vsyncpa [#allocation6], 1 }
 0x249   :  { %576 = vsyncpa [#allocation6 + $0x1], 1 }

</bundles_post_ra>
